<compile_context>
chip_gen: v5e
topology: v5e:2x2
jax: 0.10.0
libtpu: 0.0.40
codegen_flags: <defaults>
</compile_context>

<pallas_src>
import jax
import jax.numpy as jnp
from jax.experimental import pallas as pl
from jax.experimental.pallas import tpu as pltpu


def _round_up(x, m):
    return (x + m - 1) // m * m


def _cdiv(a, b):
    return (a + b - 1) // b


def _mlp_kernel(x_ref,
                w1_ref, b1_ref,
                w2_ref, b2_ref,
                w3_ref, b3_ref,
                w4_ref, b4_ref,
                o_ref):
    cdt = w1_ref.dtype  # MXU compute dtype (bf16 by default); accumulation is f32
    # Cast x in-kernel (x arrives as f32 straight from HBM: no extra XLA pass).
    x = x_ref[...].astype(cdt)
    # l1 + ReLU
    h = jnp.dot(x, w1_ref[...], preferred_element_type=jnp.float32)
    h = jnp.maximum(h + b1_ref[...], 0.0).astype(cdt)
    # l2 + ReLU
    h = jnp.dot(h, w2_ref[...], preferred_element_type=jnp.float32)
    h = jnp.maximum(h + b2_ref[...], 0.0).astype(cdt)
    # l3 + ReLU
    h = jnp.dot(h, w3_ref[...], preferred_element_type=jnp.float32)
    h = jnp.maximum(h + b3_ref[...], 0.0).astype(cdt)
    # l4 (no activation), narrow f32 output (no lane padding)
    out = jnp.dot(h, w4_ref[...], preferred_element_type=jnp.float32) + b4_ref[...]
    o_ref[...] = out.astype(o_ref.dtype)


def _chip_config():
    """Per-generation VMEM budget / grid policy (device_kind based, safe default)."""
    try:
        kind = jax.devices()[0].device_kind.lower()
    except Exception:
        kind = ""
    if "v7" in kind or "7x" in kind:
        # v7x: 64 MiB physical VMEM per TensorCore, 2 TCs per chip.
        return {"vmem_limit": 44 << 20, "vmem_budget": 34 << 20, "cores": 2}
    if "v6" in kind:
        # v6e: 128 MiB physical VMEM, 1 TC; default 32 MiB scoped is far too small.
        return {"vmem_limit": 100 << 20, "vmem_budget": 80 << 20, "cores": 1}
    if "v5p" in kind or "v4" in kind:
        # Megacore generations: 2 TensorCores share the chip.
        return {"vmem_limit": 64 << 20, "vmem_budget": 48 << 20, "cores": 2}
    if "v5" in kind:
        # v5e: 128 MiB physical but only 16 MiB default scoped -> set explicitly.
        return {"vmem_limit": 64 << 20, "vmem_budget": 48 << 20, "cores": 1}
    # Unknown chip: stay within every generation's physical VMEM.
    return {"vmem_limit": 32 << 20, "vmem_budget": 24 << 20, "cores": 1}


def _choose_tb(batch, per_row_bytes, resident_bytes, vmem_budget, min_steps):
    """Batch tile: as large as the VMEM budget allows, sized to the batch so
    padding waste stays < 8 rows/step, >= min_steps grid steps for multi-TC chips."""
    avail = max(vmem_budget - resident_bytes, 64 << 10)
    max_tb = int(min(4096, max(8, (avail // per_row_bytes) // 8 * 8)))
    n_steps = max(min_steps, _cdiv(batch, max_tb))
    tb = min(max_tb, _round_up(_cdiv(batch, n_steps), 8))
    return max(8, tb)


def prepare_params(params, compute_dtype=jnp.bfloat16):
    """One-time conversion OUTSIDE the per-call wrapper: weights -> compute dtype,
    biases -> f32. Makes the in-wrapper astype calls no-ops on every forward."""
    cdt = jnp.dtype(compute_dtype)
    out = {}
    for i in range(1, 5):
        out[f"w{i}"] = params[f"w{i}"].astype(cdt)
        out[f"b{i}"] = params[f"b{i}"].astype(jnp.float32)
    return out


def neural_net_adv_forward(x, params, *, tb=None, compute_dtype=jnp.bfloat16):
    """Forward pass of the 4-layer MLP as one fused Pallas kernel.

    x: [B, INPUT_SIZE] float32
    params: dict with w1..w4 ([in, out]) and b1..b4 ([1, out]); ideally already
            converted once via prepare_params().
    """
    B, in_f = x.shape
    h1 = params["w1"].shape[1]
    h2 = params["w2"].shape[1]
    h3 = params["w3"].shape[1]
    num_classes = params["w4"].shape[1]

    cdt = jnp.dtype(compute_dtype)
    # No-ops when params were pre-converted with prepare_params().
    ws = [params[f"w{i}"].astype(cdt) for i in range(1, 5)]
    bs = [params[f"b{i}"].astype(jnp.float32) for i in range(1, 5)]

    cfg = _chip_config()

    # VMEM accounting. Weights/biases are counted x2 (covers the fallback path
    # without pl.Buffered(1)); per-row cost = double-buffered x/out tiles +
    # in-kernel bf16 copy of x + intermediates.
    resident_bytes = 2 * sum(int(a.size) * a.dtype.itemsize for a in ws + bs)
    per_row_bytes = (in_f * 4 * 2                              # f32 x tile, 2 bufs
                     + num_classes * 4 * 2                     # f32 out tile, 2 bufs
                     + in_f * cdt.itemsize                     # in-kernel cast of x
                     + (h1 + h2 + h3) * (4 + cdt.itemsize)     # intermediates
                     + num_classes * 4)
    if tb is None:
        # Force >= 2 grid steps for mid-size batches only on multi-TC chips.
        min_steps = cfg["cores"] if B >= 64 else 1
        tb = _choose_tb(B, per_row_bytes, resident_bytes,
                        cfg["vmem_budget"], min_steps)

    n_steps = _cdiv(B, tb)
    B_pad = n_steps * tb
    # Skip the extra HBM pass over x entirely when no padding is needed.
    xc = x if B_pad == B else jnp.pad(x, ((0, B_pad - B), (0, 0)))
    grid = (n_steps,)

    flops = 2 * B_pad * (in_f * h1 + h1 * h2 + h2 * h3 + h3 * num_classes)
    bytes_accessed = (B_pad * in_f * 4 + B_pad * num_classes * 4
                      + sum(int(a.size) * a.dtype.itemsize for a in ws + bs))
    cost = pl.CostEstimate(flops=flops, transcendentals=0,
                           bytes_accessed=bytes_accessed)

    def _call(single_buffer_weights):
        resident_kwargs = (
            {"pipeline_mode": pl.Buffered(1)} if single_buffer_weights else {})

        def full_spec(shape):
            # Constant block index: fetched once, resident across all grid steps.
            return pl.BlockSpec(tuple(shape), lambda i: (0, 0), **resident_kwargs)

        in_specs = [pl.BlockSpec((tb, in_f), lambda i: (i, 0))]
        for w, b in zip(ws, bs):
            in_specs += [full_spec(w.shape), full_spec(b.shape)]
        # Unpadded output block: last dim equals full array dim -> legal block,
        # and the HBM writeback stream is num_classes wide, not 128.
        out_spec = pl.BlockSpec((tb, num_classes), lambda i: (i, 0))

        return pl.pallas_call(
            _mlp_kernel,
            out_shape=jax.ShapeDtypeStruct((B_pad, num_classes), jnp.float32),
            grid_spec=pltpu.PrefetchScalarGridSpec(
                num_scalar_prefetch=0,
                grid=grid,
                in_specs=in_specs,
                out_specs=out_spec,
            ),
            compiler_params=pltpu.CompilerParams(
                # Batch tiles are independent -> shard across TCs where possible.
                dimension_semantics=("parallel",),
                vmem_limit_bytes=cfg["vmem_limit"],
            ),
            cost_estimate=cost,
        )(xc, ws[0], bs[0], ws[1], bs[1], ws[2], bs[2], ws[3], bs[3])

    try:
        out = _call(True)
    except Exception:
        # pl.Buffered(1) on resident weight specs not supported by this
        # jax/Mosaic version -> plain double-buffered specs (still correct).
        out = _call(False)

    return out if B_pad == B else out[:B]


def init_params(key, input_size, hidden_size, num_classes):
    """Deterministic parameter init mirroring the module's layer shapes."""
    sizes = [
        (input_size, hidden_size),               # l1
        (hidden_size, hidden_size // 2),         # l2
        (hidden_size // 2, hidden_size // 8),    # l3
        (hidden_size // 8, num_classes),         # l4
    ]
    params = {}
    for idx, (fan_in, fan_out) in enumerate(sizes, start=1):
        key, kw, kb = jax.random.split(key, 3)
        bound = 1.0 / jnp.sqrt(float(fan_in))  # PyTorch default U(-1/sqrt(in), 1/sqrt(in))
        params[f"w{idx}"] = jax.random.uniform(
            kw, (fan_in, fan_out), jnp.float32, -bound, bound)
        params[f"b{idx}"] = jax.random.uniform(
            kb, (1, fan_out), jnp.float32, -bound, bound)
    return params


def reference_forward(x, params, compute_dtype=None):
    """Pure-JAX reference. If compute_dtype is set, mirrors the kernel's
    mixed-precision scheme (bf16 operands, f32 accumulation/elementwise)."""
    def lin(h, w, b):
        if compute_dtype is not None:
            h = h.astype(compute_dtype)
            w = w.astype(compute_dtype)
        return jnp.dot(h, w, preferred_element_type=jnp.float32) + b
    h = jnp.maximum(lin(x, params["w1"], params["b1"]), 0.0)
    h = jnp.maximum(lin(h, params["w2"], params["b2"]), 0.0)
    h = jnp.maximum(lin(h, params["w3"], params["b3"]), 0.0)
    return lin(h, params["w4"], params["b4"])


if __name__ == "__main__":
    INPUT_SIZE, HIDDEN_SIZE, NUM_CLASSES = 32, 32, 8
    BATCH = 8

    key = jax.random.PRNGKey(0)
    key, kx = jax.random.split(key)
    x = jax.random.normal(kx, (BATCH, INPUT_SIZE), jnp.float32)
    params = init_params(key, INPUT_SIZE, HIDDEN_SIZE, NUM_CLASSES)

    # One-time weight/bias conversion outside the forward wrapper.
    prepared = prepare_params(params, compute_dtype=jnp.bfloat16)

    out = neural_net_adv_forward(x, prepared)
    out = jax.block_until_ready(out)
    assert out.shape == (BATCH, NUM_CLASSES)
    assert out.dtype == jnp.float32

    # Tight check against a reference that mirrors the kernel's mixed precision.
    ref_mixed = reference_forward(x, params, compute_dtype=jnp.bfloat16)
    assert jnp.allclose(out, ref_mixed, atol=1e-3, rtol=1e-3), \
        f"mixed-precision mismatch: {float(jnp.max(jnp.abs(out - ref_mixed)))}"

    # Loose check against the full-f32 PyTorch-equivalent semantics.
    ref_f32 = reference_forward(x, params)
    assert jnp.allclose(out, ref_f32, atol=3e-2, rtol=3e-2), \
        f"f32 mismatch: {float(jnp.max(jnp.abs(out - ref_f32)))}"

    print("KERNEL_OK")
</pallas_src>

<mosaic_0001>
module attributes {stable_mosaic.version = 11 : i64} {
  func.func @_mlp_kernel(%arg0: i32, %arg1: memref<8x32xf32, #tpu.memory_space<vmem>>, %arg2: memref<32x32xbf16, #tpu.memory_space<vmem>>, %arg3: memref<1x32xf32, #tpu.memory_space<vmem>>, %arg4: memref<32x16xbf16, #tpu.memory_space<vmem>>, %arg5: memref<1x16xf32, #tpu.memory_space<vmem>>, %arg6: memref<16x4xbf16, #tpu.memory_space<vmem>>, %arg7: memref<1x4xf32, #tpu.memory_space<vmem>>, %arg8: memref<4x8xbf16, #tpu.memory_space<vmem>>, %arg9: memref<1x8xf32, #tpu.memory_space<vmem>>, %arg10: memref<8x8xf32, #tpu.memory_space<vmem>>) attributes {dimension_semantics = [#tpu.dimension_semantics<parallel>], iteration_bounds = array<i64: 1>, scalar_prefetch = 0 : i64, scratch_operands = 0 : i64, tpu.core_type = #tpu.core_type<tc>, window_params = [{transform_indices = @transform_0, window_bounds = array<i64: 8, 32>}, {pipeline_mode = #tpu.pipeline_mode<synchronous>, transform_indices = @transform_1, window_bounds = array<i64: 32, 32>}, {pipeline_mode = #tpu.pipeline_mode<synchronous>, transform_indices = @transform_2, window_bounds = array<i64: 1, 32>}, {pipeline_mode = #tpu.pipeline_mode<synchronous>, transform_indices = @transform_3, window_bounds = array<i64: 32, 16>}, {pipeline_mode = #tpu.pipeline_mode<synchronous>, transform_indices = @transform_4, window_bounds = array<i64: 1, 16>}, {pipeline_mode = #tpu.pipeline_mode<synchronous>, transform_indices = @transform_5, window_bounds = array<i64: 16, 4>}, {pipeline_mode = #tpu.pipeline_mode<synchronous>, transform_indices = @transform_6, window_bounds = array<i64: 1, 4>}, {pipeline_mode = #tpu.pipeline_mode<synchronous>, transform_indices = @transform_7, window_bounds = array<i64: 4, 8>}, {pipeline_mode = #tpu.pipeline_mode<synchronous>, transform_indices = @transform_8, window_bounds = array<i64: 1, 8>}, {transform_indices = @transform_9, window_bounds = array<i64: 8, 8>}]} {
    %c0 = arith.constant 0 : index
    %c0_0 = arith.constant 0 : index
    %0 = vector.load %arg1[%c0, %c0_0] : memref<8x32xf32, #tpu.memory_space<vmem>>, vector<8x32xf32>
    %1 = arith.truncf %0 : vector<8x32xf32> to vector<8x32xbf16>
    %c0_1 = arith.constant 0 : index
    %c0_2 = arith.constant 0 : index
    %2 = vector.load %arg2[%c0_1, %c0_2] : memref<32x32xbf16, #tpu.memory_space<vmem>>, vector<32x32xbf16>
    %cst = arith.constant dense<0.000000e+00> : vector<8x32xf32>
    %3 = tpu.matmul %1, %2, %cst {dimension_numbers = #tpu.dot_dimension_numbers<[1], [0], [0], [1], [0, 0, 1, 1], [], []>} : vector<8x32xbf16>, vector<32x32xbf16>, vector<8x32xf32> -> vector<8x32xf32>
    %c0_3 = arith.constant 0 : index
    %c0_4 = arith.constant 0 : index
    %4 = vector.load %arg3[%c0_3, %c0_4] : memref<1x32xf32, #tpu.memory_space<vmem>>, vector<1x32xf32>
    %5 = vector.broadcast %4 : vector<1x32xf32> to vector<8x32xf32>
    %6 = arith.addf %3, %5 : vector<8x32xf32>
    %cst_5 = arith.constant 0.000000e+00 : f32
    %7 = vector.broadcast %cst_5 : f32 to vector<8x32xf32>
    %8 = arith.maximumf %6, %7 : vector<8x32xf32>
    %9 = arith.truncf %8 : vector<8x32xf32> to vector<8x32xbf16>
    %c0_6 = arith.constant 0 : index
    %c0_7 = arith.constant 0 : index
    %10 = vector.load %arg4[%c0_6, %c0_7] : memref<32x16xbf16, #tpu.memory_space<vmem>>, vector<32x16xbf16>
    %cst_8 = arith.constant dense<0.000000e+00> : vector<8x16xf32>
    %11 = tpu.matmul %9, %10, %cst_8 {dimension_numbers = #tpu.dot_dimension_numbers<[1], [0], [0], [1], [0, 0, 1, 1], [], []>} : vector<8x32xbf16>, vector<32x16xbf16>, vector<8x16xf32> -> vector<8x16xf32>
    %c0_9 = arith.constant 0 : index
    %c0_10 = arith.constant 0 : index
    %12 = vector.load %arg5[%c0_9, %c0_10] : memref<1x16xf32, #tpu.memory_space<vmem>>, vector<1x16xf32>
    %13 = vector.broadcast %12 : vector<1x16xf32> to vector<8x16xf32>
    %14 = arith.addf %11, %13 : vector<8x16xf32>
    %cst_11 = arith.constant 0.000000e+00 : f32
    %15 = vector.broadcast %cst_11 : f32 to vector<8x16xf32>
    %16 = arith.maximumf %14, %15 : vector<8x16xf32>
    %17 = arith.truncf %16 : vector<8x16xf32> to vector<8x16xbf16>
    %c0_12 = arith.constant 0 : index
    %c0_13 = arith.constant 0 : index
    %18 = vector.load %arg6[%c0_12, %c0_13] : memref<16x4xbf16, #tpu.memory_space<vmem>>, vector<16x4xbf16>
    %cst_14 = arith.constant dense<0.000000e+00> : vector<8x4xf32>
    %19 = tpu.matmul %17, %18, %cst_14 {dimension_numbers = #tpu.dot_dimension_numbers<[1], [0], [0], [1], [0, 0, 1, 1], [], []>} : vector<8x16xbf16>, vector<16x4xbf16>, vector<8x4xf32> -> vector<8x4xf32>
    %c0_15 = arith.constant 0 : index
    %c0_16 = arith.constant 0 : index
    %20 = vector.load %arg7[%c0_15, %c0_16] : memref<1x4xf32, #tpu.memory_space<vmem>>, vector<1x4xf32>
    %21 = vector.broadcast %20 : vector<1x4xf32> to vector<8x4xf32>
    %22 = arith.addf %19, %21 : vector<8x4xf32>
    %cst_17 = arith.constant 0.000000e+00 : f32
    %23 = vector.broadcast %cst_17 : f32 to vector<8x4xf32>
    %24 = arith.maximumf %22, %23 : vector<8x4xf32>
    %25 = arith.truncf %24 : vector<8x4xf32> to vector<8x4xbf16>
    %c0_18 = arith.constant 0 : index
    %c0_19 = arith.constant 0 : index
    %26 = vector.load %arg8[%c0_18, %c0_19] : memref<4x8xbf16, #tpu.memory_space<vmem>>, vector<4x8xbf16>
    %cst_20 = arith.constant dense<0.000000e+00> : vector<8x8xf32>
    %27 = tpu.matmul %25, %26, %cst_20 {dimension_numbers = #tpu.dot_dimension_numbers<[1], [0], [0], [1], [0, 0, 1, 1], [], []>} : vector<8x4xbf16>, vector<4x8xbf16>, vector<8x8xf32> -> vector<8x8xf32>
    %c0_21 = arith.constant 0 : index
    %c0_22 = arith.constant 0 : index
    %28 = vector.load %arg9[%c0_21, %c0_22] : memref<1x8xf32, #tpu.memory_space<vmem>>, vector<1x8xf32>
    %29 = vector.broadcast %28 : vector<1x8xf32> to vector<8x8xf32>
    %30 = arith.addf %27, %29 : vector<8x8xf32>
    %c0_23 = arith.constant 0 : index
    %c0_24 = arith.constant 0 : index
    %31 = vector.load %arg10[%c0_23, %c0_24] : memref<8x8xf32, #tpu.memory_space<vmem>>, vector<8x8xf32>
    tpu.vector_store %arg10[%c0_23, %c0_24], %30 {strides = array<i32>} : memref<8x8xf32, #tpu.memory_space<vmem>>, vector<8x8xf32>,
    return
  }
  func.func @transform_0(%arg0: i32) -> (i32, i32) {
    %c0_i32 = arith.constant 0 : i32
    %c0_i32_0 = arith.constant 0 : i32
    return %arg0, %c0_i32 : i32, i32
  }
  func.func @transform_1(%arg0: i32) -> (i32, i32) {
    %c0_i32 = arith.constant 0 : i32
    %c0_i32_0 = arith.constant 0 : i32
    %c0_i32_1 = arith.constant 0 : i32
    return %c0_i32, %c0_i32_0 : i32, i32
  }
  func.func @transform_2(%arg0: i32) -> (i32, i32) {
    %c0_i32 = arith.constant 0 : i32
    %c0_i32_0 = arith.constant 0 : i32
    %c0_i32_1 = arith.constant 0 : i32
    return %c0_i32, %c0_i32_0 : i32, i32
  }
  func.func @transform_3(%arg0: i32) -> (i32, i32) {
    %c0_i32 = arith.constant 0 : i32
    %c0_i32_0 = arith.constant 0 : i32
    %c0_i32_1 = arith.constant 0 : i32
    return %c0_i32, %c0_i32_0 : i32, i32
  }
  func.func @transform_4(%arg0: i32) -> (i32, i32) {
    %c0_i32 = arith.constant 0 : i32
    %c0_i32_0 = arith.constant 0 : i32
    %c0_i32_1 = arith.constant 0 : i32
    return %c0_i32, %c0_i32_0 : i32, i32
  }
  func.func @transform_5(%arg0: i32) -> (i32, i32) {
    %c0_i32 = arith.constant 0 : i32
    %c0_i32_0 = arith.constant 0 : i32
    %c0_i32_1 = arith.constant 0 : i32
    return %c0_i32, %c0_i32_0 : i32, i32
  }
  func.func @transform_6(%arg0: i32) -> (i32, i32) {
    %c0_i32 = arith.constant 0 : i32
    %c0_i32_0 = arith.constant 0 : i32
    %c0_i32_1 = arith.constant 0 : i32
    return %c0_i32, %c0_i32_0 : i32, i32
  }
  func.func @transform_7(%arg0: i32) -> (i32, i32) {
    %c0_i32 = arith.constant 0 : i32
    %c0_i32_0 = arith.constant 0 : i32
    %c0_i32_1 = arith.constant 0 : i32
    return %c0_i32, %c0_i32_0 : i32, i32
  }
  func.func @transform_8(%arg0: i32) -> (i32, i32) {
    %c0_i32 = arith.constant 0 : i32
    %c0_i32_0 = arith.constant 0 : i32
    %c0_i32_1 = arith.constant 0 : i32
    return %c0_i32, %c0_i32_0 : i32, i32
  }
  func.func @transform_9(%arg0: i32) -> (i32, i32) {
    %c0_i32 = arith.constant 0 : i32
    %c0_i32_0 = arith.constant 0 : i32
    return %arg0, %c0_i32 : i32, i32
  }
}

module attributes {stable_mosaic.version = 11 : i64} {
  func.func @_mlp_kernel(%arg0: i32, %arg1: memref<8x32xf32, #tpu.memory_space<vmem>>, %arg2: memref<32x32xbf16, #tpu.memory_space<vmem>>, %arg3: memref<1x32xf32, #tpu.memory_space<vmem>>, %arg4: memref<32x16xbf16, #tpu.memory_space<vmem>>, %arg5: memref<1x16xf32, #tpu.memory_space<vmem>>, %arg6: memref<16x4xbf16, #tpu.memory_space<vmem>>, %arg7: memref<1x4xf32, #tpu.memory_space<vmem>>, %arg8: memref<4x8xbf16, #tpu.memory_space<vmem>>, %arg9: memref<1x8xf32, #tpu.memory_space<vmem>>, %arg10: memref<8x8xf32, #tpu.memory_space<vmem>>) attributes {dimension_semantics = [#tpu.dimension_semantics<parallel>], iteration_bounds = array<i64: 1>, scalar_prefetch = 0 : i64, scratch_operands = 0 : i64, tpu.core_type = #tpu.core_type<tc>, window_params = [{transform_indices = @transform_0, window_bounds = array<i64: 8, 32>}, {pipeline_mode = #tpu.pipeline_mode<synchronous>, transform_indices = @transform_1, window_bounds = array<i64: 32, 32>}, {pipeline_mode = #tpu.pipeline_mode<synchronous>, transform_indices = @transform_2, window_bounds = array<i64: 1, 32>}, {pipeline_mode = #tpu.pipeline_mode<synchronous>, transform_indices = @transform_3, window_bounds = array<i64: 32, 16>}, {pipeline_mode = #tpu.pipeline_mode<synchronous>, transform_indices = @transform_4, window_bounds = array<i64: 1, 16>}, {pipeline_mode = #tpu.pipeline_mode<synchronous>, transform_indices = @transform_5, window_bounds = array<i64: 16, 4>}, {pipeline_mode = #tpu.pipeline_mode<synchronous>, transform_indices = @transform_6, window_bounds = array<i64: 1, 4>}, {pipeline_mode = #tpu.pipeline_mode<synchronous>, transform_indices = @transform_7, window_bounds = array<i64: 4, 8>}, {pipeline_mode = #tpu.pipeline_mode<synchronous>, transform_indices = @transform_8, window_bounds = array<i64: 1, 8>}, {transform_indices = @transform_9, window_bounds = array<i64: 8, 8>}]} {
    %c0 = arith.constant 0 : index
    %c0_0 = arith.constant 0 : index
    %0 = vector.load %arg1[%c0, %c0_0] : memref<8x32xf32, #tpu.memory_space<vmem>>, vector<8x32xf32>
    %1 = arith.truncf %0 : vector<8x32xf32> to vector<8x32xbf16>
    %c0_1 = arith.constant 0 : index
    %c0_2 = arith.constant 0 : index
    %2 = vector.load %arg2[%c0_1, %c0_2] : memref<32x32xbf16, #tpu.memory_space<vmem>>, vector<32x32xbf16>
    %cst = arith.constant dense<0.000000e+00> : vector<8x32xf32>
    %3 = tpu.matmul %1, %2, %cst {dimension_numbers = #tpu.dot_dimension_numbers<[1], [0], [0], [1], [0, 0, 1, 1], [], []>} : vector<8x32xbf16>, vector<32x32xbf16>, vector<8x32xf32> -> vector<8x32xf32>
    %c0_3 = arith.constant 0 : index
    %c0_4 = arith.constant 0 : index
    %4 = vector.load %arg3[%c0_3, %c0_4] : memref<1x32xf32, #tpu.memory_space<vmem>>, vector<1x32xf32>
    %5 = vector.broadcast %4 : vector<1x32xf32> to vector<8x32xf32>
    %6 = arith.addf %3, %5 : vector<8x32xf32>
    %cst_5 = arith.constant 0.000000e+00 : f32
    %7 = vector.broadcast %cst_5 : f32 to vector<8x32xf32>
    %8 = arith.maximumf %6, %7 : vector<8x32xf32>
    %9 = arith.truncf %8 : vector<8x32xf32> to vector<8x32xbf16>
    %c0_6 = arith.constant 0 : index
    %c0_7 = arith.constant 0 : index
    %10 = vector.load %arg4[%c0_6, %c0_7] : memref<32x16xbf16, #tpu.memory_space<vmem>>, vector<32x16xbf16>
    %cst_8 = arith.constant dense<0.000000e+00> : vector<8x16xf32>
    %11 = tpu.matmul %9, %10, %cst_8 {dimension_numbers = #tpu.dot_dimension_numbers<[1], [0], [0], [1], [0, 0, 1, 1], [], []>} : vector<8x32xbf16>, vector<32x16xbf16>, vector<8x16xf32> -> vector<8x16xf32>
    %c0_9 = arith.constant 0 : index
    %c0_10 = arith.constant 0 : index
    %12 = vector.load %arg5[%c0_9, %c0_10] : memref<1x16xf32, #tpu.memory_space<vmem>>, vector<1x16xf32>
    %13 = vector.broadcast %12 : vector<1x16xf32> to vector<8x16xf32>
    %14 = arith.addf %11, %13 : vector<8x16xf32>
    %cst_11 = arith.constant 0.000000e+00 : f32
    %15 = vector.broadcast %cst_11 : f32 to vector<8x16xf32>
    %16 = arith.maximumf %14, %15 : vector<8x16xf32>
    %17 = arith.truncf %16 : vector<8x16xf32> to vector<8x16xbf16>
    %c0_12 = arith.constant 0 : index
    %c0_13 = arith.constant 0 : index
    %18 = vector.load %arg6[%c0_12, %c0_13] : memref<16x4xbf16, #tpu.memory_space<vmem>>, vector<16x4xbf16>
    %cst_14 = arith.constant dense<0.000000e+00> : vector<8x4xf32>
    %19 = tpu.matmul %17, %18, %cst_14 {dimension_numbers = #tpu.dot_dimension_numbers<[1], [0], [0], [1], [0, 0, 1, 1], [], []>} : vector<8x16xbf16>, vector<16x4xbf16>, vector<8x4xf32> -> vector<8x4xf32>
    %c0_15 = arith.constant 0 : index
    %c0_16 = arith.constant 0 : index
    %20 = vector.load %arg7[%c0_15, %c0_16] : memref<1x4xf32, #tpu.memory_space<vmem>>, vector<1x4xf32>
    %21 = vector.broadcast %20 : vector<1x4xf32> to vector<8x4xf32>
    %22 = arith.addf %19, %21 : vector<8x4xf32>
    %cst_17 = arith.constant 0.000000e+00 : f32
    %23 = vector.broadcast %cst_17 : f32 to vector<8x4xf32>
    %24 = arith.maximumf %22, %23 : vector<8x4xf32>
    %25 = arith.truncf %24 : vector<8x4xf32> to vector<8x4xbf16>
    %c0_18 = arith.constant 0 : index
    %c0_19 = arith.constant 0 : index
    %26 = vector.load %arg8[%c0_18, %c0_19] : memref<4x8xbf16, #tpu.memory_space<vmem>>, vector<4x8xbf16>
    %cst_20 = arith.constant dense<0.000000e+00> : vector<8x8xf32>
    %27 = tpu.matmul %25, %26, %cst_20 {dimension_numbers = #tpu.dot_dimension_numbers<[1], [0], [0], [1], [0, 0, 1, 1], [], []>} : vector<8x4xbf16>, vector<4x8xbf16>, vector<8x8xf32> -> vector<8x8xf32>
    %c0_21 = arith.constant 0 : index
    %c0_22 = arith.constant 0 : index
    %28 = vector.load %arg9[%c0_21, %c0_22] : memref<1x8xf32, #tpu.memory_space<vmem>>, vector<1x8xf32>
    %29 = vector.broadcast %28 : vector<1x8xf32> to vector<8x8xf32>
    %30 = arith.addf %27, %29 : vector<8x8xf32>
    %c0_23 = arith.constant 0 : index
    %c0_24 = arith.constant 0 : index
    %31 = vector.load %arg10[%c0_23, %c0_24] : memref<8x8xf32, #tpu.memory_space<vmem>>, vector<8x8xf32>
    tpu.vector_store %arg10[%c0_23, %c0_24], %30 {strides = array<i32>} : memref<8x8xf32, #tpu.memory_space<vmem>>, vector<8x8xf32>,
    return
  }
  func.func @transform_0(%arg0: i32) -> (i32, i32) {
    %c0_i32 = arith.constant 0 : i32
    %c0_i32_0 = arith.constant 0 : i32
    return %arg0, %c0_i32 : i32, i32
  }
  func.func @transform_1(%arg0: i32) -> (i32, i32) {
    %c0_i32 = arith.constant 0 : i32
    %c0_i32_0 = arith.constant 0 : i32
    %c0_i32_1 = arith.constant 0 : i32
    return %c0_i32, %c0_i32_0 : i32, i32
  }
  func.func @transform_2(%arg0: i32) -> (i32, i32) {
    %c0_i32 = arith.constant 0 : i32
    %c0_i32_0 = arith.constant 0 : i32
    %c0_i32_1 = arith.constant 0 : i32
    return %c0_i32, %c0_i32_0 : i32, i32
  }
  func.func @transform_3(%arg0: i32) -> (i32, i32) {
    %c0_i32 = arith.constant 0 : i32
    %c0_i32_0 = arith.constant 0 : i32
    %c0_i32_1 = arith.constant 0 : i32
    return %c0_i32, %c0_i32_0 : i32, i32
  }
  func.func @transform_4(%arg0: i32) -> (i32, i32) {
    %c0_i32 = arith.constant 0 : i32
    %c0_i32_0 = arith.constant 0 : i32
    %c0_i32_1 = arith.constant 0 : i32
    return %c0_i32, %c0_i32_0 : i32, i32
  }
  func.func @transform_5(%arg0: i32) -> (i32, i32) {
    %c0_i32 = arith.constant 0 : i32
    %c0_i32_0 = arith.constant 0 : i32
    %c0_i32_1 = arith.constant 0 : i32
    return %c0_i32, %c0_i32_0 : i32, i32
  }
  func.func @transform_6(%arg0: i32) -> (i32, i32) {
    %c0_i32 = arith.constant 0 : i32
    %c0_i32_0 = arith.constant 0 : i32
    %c0_i32_1 = arith.constant 0 : i32
    return %c0_i32, %c0_i32_0 : i32, i32
  }
  func.func @transform_7(%arg0: i32) -> (i32, i32) {
    %c0_i32 = arith.constant 0 : i32
    %c0_i32_0 = arith.constant 0 : i32
    %c0_i32_1 = arith.constant 0 : i32
    return %c0_i32, %c0_i32_0 : i32, i32
  }
  func.func @transform_8(%arg0: i32) -> (i32, i32) {
    %c0_i32 = arith.constant 0 : i32
    %c0_i32_0 = arith.constant 0 : i32
    %c0_i32_1 = arith.constant 0 : i32
    return %c0_i32, %c0_i32_0 : i32, i32
  }
  func.func @transform_9(%arg0: i32) -> (i32, i32) {
    %c0_i32 = arith.constant 0 : i32
    %c0_i32_0 = arith.constant 0 : i32
    return %arg0, %c0_i32 : i32, i32
  }
}

</mosaic_0001>

<bundles_post_ra>
// kernel: tpu_custom_call.1
= control target key start
LH: loop header
LB: loop body
LE: loop exit
PB: predicated region body
PF: predicated region fallthrough
CT: control target
= control target key end

     0   :  { %14 = vsyncpa [#allocation3], 0  ;;  %s378_s0 = inlined_call_operand.vmem [shape: f32[8,32], index: 0, kind: input, shape index: {}]   ;;  %s379_s1 = inlined_call_operand.vmem [shape: bf16[32,32], index: 1, kind: input, shape index: {}]   ;;  %s380_s2 = inlined_call_operand.vmem [shape: f32[1,32], index: 2, kind: input, shape index: {}]   ;;  %s381_s3 = inlined_call_operand.vmem [shape: bf16[32,16], index: 3, kind: input, shape index: {}]   ;;  %s382_s4 = inlined_call_operand.hbm [shape: f32[1,16], index: 4, kind: input, shape index: {}]   ;;  %s383_s5 = inlined_call_operand.vmem [shape: bf16[16,4], index: 5, kind: input, shape index: {}]   ;;  %s384_s6 = inlined_call_operand.vmem [shape: f32[1,4], index: 6, kind: input, shape index: {}]   ;;  %s385_s7 = inlined_call_operand.vmem [shape: bf16[4,8], index: 7, kind: input, shape index: {}]   ;;  %s386_s8 = inlined_call_operand.vmem [shape: f32[1,8], index: 8, kind: input, shape index: {}]   ;;  %s387_s9 = inlined_call_operand.hbm [shape: f32[8,8], index: 9, kind: output, shape index: {}]  }
   0x1   :  { %15 = vsyncpa [#allocation4], 0  ;;  %s29_s11 = sshll.u32 %s382_s4, 4  ;;  %s290_s12 = smov [#allocation2]   ;;  %s30_s11 = int_to_ptr.hbm [resolvable:$true] %s29_s11 }
   0x2   :  { %s31_s13 = sshll.u32 %s290_s12, 4  ;;  %s32_s13 = int_to_ptr.vmem [resolvable:$true] %s31_s13 }
   0x3   :  { %34 = dma.hbm_to_vmem [thread:$0]  %s30_s11, 16, %s32_s13, [#allocation3]  }
   0x4   :  { %286 = dma.done.wait [#allocation3], 16  }
   0x5   :  { %287 = vsyncadd [#allocation3], 4294967280  ;;  %v228_v0 = vld [vmem:[%s379_s1 + $0x8] sm:$0xff]  ;;  %v227_v1 = vld [vmem:[%s379_s1] sm:$0xff]  ;;  %vm70_vm0 = vcmask 261120   ;;  %vm139_vm1 = vcmask 130048  }
   0x6   :  { %80 = vmatpush.bf16.msra.mxu0 %v228_v0  ;;  %v48_v2 = vld [vmem:[%s378_s0] sm:$0xff]  ;;  %v230_v4 = vld [vmem:[%s381_s3 + $0x8] sm:$0xff]  ;;  %vm167_vm2 = vcmask 1041408   ;;  %vm163_vm3 = vcmask 31744   ;;  %s291_s28 = smov [#allocation5]   ;;  %s193_s10 = sshll.u32 %s387_s9, 4  ;;  %s194_s10 = int_to_ptr.hbm [resolvable:$true] %s193_s10 }
   0x7   :  { %v49_v3 = vpack.c.bf16 %v48_v2, %v48_v2  ;;  %118 = vmatpush.bf16.msra.mxu1 %v230_v4  ;;  %v229_v5 = vld [vmem:[%s381_s3] sm:$0xff]  ;;  %vm184_vm4 = vcmask 64512  }
   0x8   :  { %v234_v6 = vld [vmem:[%s380_s2] ss:$0 sm:$0xff] }
   0x9   :  { %v231_v12 = vld [vmem:[%s383_s5] sm:$0xff] }
   0xa   :  { %81 = vmatpush.bf16.msra.mxu0 %v227_v1  ;;  %150 = vmatpush.bf16.msra.mxu2 %v231_v12  ;;  %v235_v13 = vld [vmem:[#allocation2] ss:$0 sm:$0xff] }
   0xb   :  { %119 = vmatpush.bf16.msra.mxu1 %v229_v5  ;;  %v158_v19 = vld [vmem:[%s385_s7] sm:$0x3]  ;;  %s191_s7 = sshll.u32 %s291_s28, 4  ;;  %s192_s7 = int_to_ptr.vmem [resolvable:$true] %s191_s7 }
   0xc   :  { %v169_v20 = vsel %vm167_vm2, %v158_v19, 0  ;;  %v236_v21 = vld [vmem:[%s384_s6] ss:$0 sm:$0xff] }
   0xd   :  { %211 = vmatmul.msk.bf16.vlgmr.msra.gmra.mxu0 %vm70_vm0, %v49_v3  ;;  %178 = vmatpush.bf16.msra.mxu3 %v169_v20  ;;  %v237_v27 = vld [vmem:[%s386_s8] ss:$0 sm:$0xff] }
  0x8a   :  { %v83_v7 = vpop.f32.mrf.mxu0 }
  0x8b   :  { %v84_v8 = vadd.f32 %v234_v6, %v83_v7 }
  0x8d   :  { %v87_v9 = vmax.f32 %v84_v8, 0.0 }
  0x8f   :  { %v88_v10 = vpack.c.bf16 %v87_v9, %v87_v9 }
  0x91   :  { %220 = vmatmul.msk.bf16.vlgmr.msra.gmra.mxu1 %vm70_vm0, %v88_v10 }
  0x92   :  { %v85_v11 = vpop.f32.mrf.mxu0 }
 0x10e   :  { %v121_v14 = vpop.f32.mrf.mxu1 }
 0x10f   :  { %v122_v15 = vadd.f32 %v235_v13, %v121_v14 }
 0x111   :  { %v125_v16 = vmax.f32 %v122_v15, 0.0 }
 0x113   :  { %v126_v17 = vpack.c.bf16 %v125_v16, %v125_v16 }
 0x115   :  { %225 = vmatmul.msk.bf16.vlgmr.msra.gmra.mxu2 %vm139_vm1, %v126_v17 }
 0x116   :  { %v123_v18 = vpop.f32.mrf.mxu1 }
 0x198   :  { %v152_v22 = vpop.f32.mrf.mxu2 }
 0x199   :  { %v153_v23 = vadd.f32 %v236_v21, %v152_v22 }
 0x19b   :  { %v156_v24 = vmax.f32 %v153_v23, 0.0 }
 0x19d   :  { %v157_v25 = vpack.c.bf16 %v156_v24, %v156_v24 }
 0x19f   :  { %226 = vmatmul.msk.bf16.vlgmr.msra.gmra.mxu3 %vm163_vm3, %v157_v25 }
 0x1a0   :  { %v154_v26 = vpop.f32.mrf.mxu2 }
 0x222   :  { %v180_v28 = vpop.f32.mrf.mxu3 }
 0x223   :  { %v181_v29 = vadd.f32 %v237_v27, %v180_v28 }
 0x225   :  { %185 = vst.msk [vmem:[#allocation5] sm:$0xff] %vm184_vm4, %v181_v29 }
 0x226   :  { %196 = dma.vmem_to_hbm [thread:$0]  %s192_s7, 128, %s194_s10, [#allocation4]  }
 0x22a   :  { %v182_v30 = vpop.f32.mrf.mxu3 }
 0x22b   :  { %288 = dma.done.wait [#allocation4], 128  }
 0x22c   :  { %289 = vsyncadd [#allocation4], 4294967168 }
 0x22d   :  { %201 = vsyncpa [#allocation3], 1 }
 0x22e   :  { %202 = vsyncpa [#allocation4], 1 }

// kernel: tpu_custom_call.1
= control target key start
LH: loop header
LB: loop body
LE: loop exit
PB: predicated region body
PF: predicated region fallthrough
CT: control target
= control target key end

     0   :  { %14 = vsyncpa [#allocation3], 0  ;;  %s378_s0 = inlined_call_operand.vmem [shape: f32[8,32], index: 0, kind: input, shape index: {}]   ;;  %s379_s1 = inlined_call_operand.vmem [shape: bf16[32,32], index: 1, kind: input, shape index: {}]   ;;  %s380_s2 = inlined_call_operand.vmem [shape: f32[1,32], index: 2, kind: input, shape index: {}]   ;;  %s381_s3 = inlined_call_operand.vmem [shape: bf16[32,16], index: 3, kind: input, shape index: {}]   ;;  %s382_s4 = inlined_call_operand.hbm [shape: f32[1,16], index: 4, kind: input, shape index: {}]   ;;  %s383_s5 = inlined_call_operand.vmem [shape: bf16[16,4], index: 5, kind: input, shape index: {}]   ;;  %s384_s6 = inlined_call_operand.vmem [shape: f32[1,4], index: 6, kind: input, shape index: {}]   ;;  %s385_s7 = inlined_call_operand.vmem [shape: bf16[4,8], index: 7, kind: input, shape index: {}]   ;;  %s386_s8 = inlined_call_operand.vmem [shape: f32[1,8], index: 8, kind: input, shape index: {}]   ;;  %s387_s9 = inlined_call_operand.hbm [shape: f32[8,8], index: 9, kind: output, shape index: {}]  }
   0x1   :  { %15 = vsyncpa [#allocation4], 0  ;;  %s29_s11 = sshll.u32 %s382_s4, 4  ;;  %s290_s12 = smov [#allocation2]   ;;  %s30_s11 = int_to_ptr.hbm [resolvable:$true] %s29_s11 }
   0x2   :  { %s31_s13 = sshll.u32 %s290_s12, 4  ;;  %s32_s13 = int_to_ptr.vmem [resolvable:$true] %s31_s13 }
   0x3   :  { %34 = dma.hbm_to_vmem [thread:$0]  %s30_s11, 16, %s32_s13, [#allocation3]  }
   0x4   :  { %286 = dma.done.wait [#allocation3], 16  }
   0x5   :  { %287 = vsyncadd [#allocation3], 4294967280  ;;  %v228_v0 = vld [vmem:[%s379_s1 + $0x8] sm:$0xff]  ;;  %v227_v1 = vld [vmem:[%s379_s1] sm:$0xff]  ;;  %vm70_vm0 = vcmask 261120   ;;  %vm139_vm1 = vcmask 130048  }
   0x6   :  { %80 = vmatpush.bf16.msra.mxu0 %v228_v0  ;;  %v48_v2 = vld [vmem:[%s378_s0] sm:$0xff]  ;;  %v230_v4 = vld [vmem:[%s381_s3 + $0x8] sm:$0xff]  ;;  %vm167_vm2 = vcmask 1041408   ;;  %vm163_vm3 = vcmask 31744   ;;  %s291_s28 = smov [#allocation5]   ;;  %s193_s10 = sshll.u32 %s387_s9, 4  ;;  %s194_s10 = int_to_ptr.hbm [resolvable:$true] %s193_s10 }
   0x7   :  { %v49_v3 = vpack.c.bf16 %v48_v2, %v48_v2  ;;  %118 = vmatpush.bf16.msra.mxu1 %v230_v4  ;;  %v229_v5 = vld [vmem:[%s381_s3] sm:$0xff]  ;;  %vm184_vm4 = vcmask 64512  }
   0x8   :  { %v234_v6 = vld [vmem:[%s380_s2] ss:$0 sm:$0xff] }
   0x9   :  { %v231_v12 = vld [vmem:[%s383_s5] sm:$0xff] }
   0xa   :  { %81 = vmatpush.bf16.msra.mxu0 %v227_v1  ;;  %150 = vmatpush.bf16.msra.mxu2 %v231_v12  ;;  %v235_v13 = vld [vmem:[#allocation2] ss:$0 sm:$0xff] }
   0xb   :  { %119 = vmatpush.bf16.msra.mxu1 %v229_v5  ;;  %v158_v19 = vld [vmem:[%s385_s7] sm:$0x3]  ;;  %s191_s7 = sshll.u32 %s291_s28, 4  ;;  %s192_s7 = int_to_ptr.vmem [resolvable:$true] %s191_s7 }
   0xc   :  { %v169_v20 = vsel %vm167_vm2, %v158_v19, 0  ;;  %v236_v21 = vld [vmem:[%s384_s6] ss:$0 sm:$0xff] }
   0xd   :  { %211 = vmatmul.msk.bf16.vlgmr.msra.gmra.mxu0 %vm70_vm0, %v49_v3  ;;  %178 = vmatpush.bf16.msra.mxu3 %v169_v20  ;;  %v237_v27 = vld [vmem:[%s386_s8] ss:$0 sm:$0xff] }
  0x8a   :  { %v83_v7 = vpop.f32.mrf.mxu0 }
  0x8b   :  { %v84_v8 = vadd.f32 %v234_v6, %v83_v7 }
  0x8d   :  { %v87_v9 = vmax.f32 %v84_v8, 0.0 }
  0x8f   :  { %v88_v10 = vpack.c.bf16 %v87_v9, %v87_v9 }
  0x91   :  { %220 = vmatmul.msk.bf16.vlgmr.msra.gmra.mxu1 %vm70_vm0, %v88_v10 }
  0x92   :  { %v85_v11 = vpop.f32.mrf.mxu0 }
 0x10e   :  { %v121_v14 = vpop.f32.mrf.mxu1 }
 0x10f   :  { %v122_v15 = vadd.f32 %v235_v13, %v121_v14 }
 0x111   :  { %v125_v16 = vmax.f32 %v122_v15, 0.0 }
 0x113   :  { %v126_v17 = vpack.c.bf16 %v125_v16, %v125_v16 }
 0x115   :  { %225 = vmatmul.msk.bf16.vlgmr.msra.gmra.mxu2 %vm139_vm1, %v126_v17 }
 0x116   :  { %v123_v18 = vpop.f32.mrf.mxu1 }
 0x198   :  { %v152_v22 = vpop.f32.mrf.mxu2 }
 0x199   :  { %v153_v23 = vadd.f32 %v236_v21, %v152_v22 }
 0x19b   :  { %v156_v24 = vmax.f32 %v153_v23, 0.0 }
 0x19d   :  { %v157_v25 = vpack.c.bf16 %v156_v24, %v156_v24 }
 0x19f   :  { %226 = vmatmul.msk.bf16.vlgmr.msra.gmra.mxu3 %vm163_vm3, %v157_v25 }
 0x1a0   :  { %v154_v26 = vpop.f32.mrf.mxu2 }
 0x222   :  { %v180_v28 = vpop.f32.mrf.mxu3 }
 0x223   :  { %v181_v29 = vadd.f32 %v237_v27, %v180_v28 }
 0x225   :  { %185 = vst.msk [vmem:[#allocation5] sm:$0xff] %vm184_vm4, %v181_v29 }
 0x226   :  { %196 = dma.vmem_to_hbm [thread:$0]  %s192_s7, 128, %s194_s10, [#allocation4]  }
 0x22a   :  { %v182_v30 = vpop.f32.mrf.mxu3 }
 0x22b   :  { %288 = dma.done.wait [#allocation4], 128  }
 0x22c   :  { %289 = vsyncadd [#allocation4], 4294967168 }
 0x22d   :  { %201 = vsyncpa [#allocation3], 1 }
 0x22e   :  { %202 = vsyncpa [#allocation4], 1 }

</bundles_post_ra>
